<compile_context>
chip_gen: v7x
topology: tpu7x:2x2x1
jax: 0.10.0
libtpu: 0.0.40
codegen_flags: <defaults>
</compile_context>

<pallas_src>
import jax
import jax.numpy as jnp
from jax.experimental import pallas as pl
from jax.experimental.pallas import tpu as pltpu


# --------------------- generation-aware VMEM budgets -------------------------

def _vmem_capacity_bytes():
    try:
        cap = int(getattr(pltpu.get_tpu_info(), "vmem_capacity_bytes", 0))
        if cap >= 16 * 1024 * 1024:
            return cap
    except Exception:
        pass
    return 64 * 1024 * 1024            # conservative fallback (v7x per-TC VMEM)


_VMEM_CAPACITY = _vmem_capacity_bytes()
_VMEM_LIMIT_BYTES = int(_VMEM_CAPACITY * 0.80)     # ~102 MiB v5e/v6e, ~51 MiB v7x
_TILE_VMEM_BUDGET = int(_VMEM_LIMIT_BYTES * 0.58)  # ~59 MiB v5e/v6e, ~30 MiB v7x
# Heuristic: parts with <=64 MiB per-core VMEM (v7x-class) have 2 TensorCores
# per chip, so keep >= 2 grid steps for megacore sharding; 128-MiB parts
# (v5e/v6e) are single-TC and a forced split is pure overhead.
_LIKELY_TWO_TC = _VMEM_CAPACITY <= 96 * 1024 * 1024

_CHUNK = 256   # lane-slab width for in-kernel streaming (multiple of 128)


# ------------------------------- fused path ---------------------------------

def _se_fused_kernel(x_ref, w1_ref, b1_ref, w2_ref, b2_ref, o_ref):
    # x_ref: (nb, C, HW) tile of batch elements.
    nb, C, HW = x_ref.shape
    nfull = HW // _CHUNK
    rem = HW - nfull * _CHUNK

    # Squeeze: global average pool, streamed over lane slabs so no full-tile
    # f32 copy is materialized (keeps nb large within v7x's 64 MiB VMEM).
    def pool_body(i, acc):
        off = pl.multiple_of(i * _CHUNK, _CHUNK)
        xb = x_ref[:, :, pl.ds(off, _CHUNK)].astype(jnp.float32)
        return acc + jnp.sum(xb, axis=-1)

    acc = jnp.zeros((nb, C), jnp.float32)
    if nfull > 0:
        acc = jax.lax.fori_loop(0, nfull, pool_body, acc)
    if rem > 0:
        acc = acc + jnp.sum(x_ref[:, :, nfull * _CHUNK:].astype(jnp.float32),
                            axis=-1)
    pooled = acc * (1.0 / HW)                                       # (nb, C)

    # Squeeze MLP with the batch dim on the lane axis: (se,C)@(C,nb).
    # Each batch element stays in its own column (important for padded rows).
    pooled_t = pooled.T                                             # (C, nb)
    h = jnp.dot(w1_ref[...].astype(jnp.float32), pooled_t,
                preferred_element_type=jnp.float32) + b1_ref[...]   # (se, nb)
    h = h * jax.nn.sigmoid(h)                                       # Swish
    s = jnp.dot(w2_ref[...].astype(jnp.float32), h,
                preferred_element_type=jnp.float32) + b2_ref[...]   # (C, nb)
    s = jax.nn.sigmoid(s)

    # Excite: stream the multiply in the input's native dtype over lane slabs.
    scale = s.T[:, :, None].astype(x_ref.dtype)                     # (nb, C, 1)

    def excite_body(i, carry):
        off = pl.multiple_of(i * _CHUNK, _CHUNK)
        o_ref[:, :, pl.ds(off, _CHUNK)] = x_ref[:, :, pl.ds(off, _CHUNK)] * scale
        return carry

    if nfull > 0:
        jax.lax.fori_loop(0, nfull, excite_body, 0)
    if rem > 0:
        o_ref[:, :, nfull * _CHUNK:] = x_ref[:, :, nfull * _CHUNK:] * scale


def _se_fused(x, w1, b1, w2, b2, nb):
    N, C, HW = x.shape
    se = w1.shape[0]
    return pl.pallas_call(
        _se_fused_kernel,
        out_shape=jax.ShapeDtypeStruct((N, C, HW), x.dtype),
        grid_spec=pltpu.PrefetchScalarGridSpec(
            num_scalar_prefetch=0,
            grid=(pl.cdiv(N, nb),),
            in_specs=[
                pl.BlockSpec((nb, C, HW), lambda n: (n, 0, 0)),
                pl.BlockSpec((se, C), lambda n: (0, 0)),
                pl.BlockSpec((se, 1), lambda n: (0, 0)),
                pl.BlockSpec((C, se), lambda n: (0, 0)),
                pl.BlockSpec((C, 1), lambda n: (0, 0)),
            ],
            out_specs=pl.BlockSpec((nb, C, HW), lambda n: (n, 0, 0)),
        ),
        compiler_params=pltpu.CompilerParams(
            dimension_semantics=("parallel",),
            vmem_limit_bytes=_VMEM_LIMIT_BYTES),
    )(x, w1, b1.reshape(se, 1), w2, b2.reshape(C, 1))


# ----------------------------- two-phase path --------------------------------

def _make_pool_mlp_kernel(thw, hw):
    need_mask = (hw % thw) != 0
    inv_hw = 1.0 / hw

    def kernel(x_ref, w1_ref, b1_ref, w2_ref, b2_ref, scale_ref, sum_sc):
        t = pl.program_id(1)

        @pl.when(t == 0)
        def _():
            sum_sc[...] = jnp.zeros_like(sum_sc)

        xb = x_ref[...].astype(jnp.float32)                  # (tn, C, thw)
        if need_mask:
            col = jax.lax.broadcasted_iota(jnp.int32, xb.shape, 2)
            xb = jnp.where(t * thw + col < hw, xb, 0.0)
        sum_sc[...] += jnp.sum(xb, axis=-1)                  # (tn, C)

        # Fused tiny squeeze MLP on the last spatial step: emit the per-(n, c)
        # gate directly (no sums HBM roundtrip, no separate XLA matmuls).
        @pl.when(t == pl.num_programs(1) - 1)
        def _():
            pooled_t = sum_sc[...].T * inv_hw                # (C, tn)
            h = jnp.dot(w1_ref[...].astype(jnp.float32), pooled_t,
                        preferred_element_type=jnp.float32) + b1_ref[...]
            h = h * jax.nn.sigmoid(h)                        # Swish
            s = jnp.dot(w2_ref[...].astype(jnp.float32), h,
                        preferred_element_type=jnp.float32) + b2_ref[...]
            s = jax.nn.sigmoid(s)                            # (C, tn)
            scale_ref[...] = s.T.astype(scale_ref.dtype)     # (tn, C), lane-dense

    return kernel


def _excite_kernel(x_ref, s_ref, o_ref):
    # x_ref: (tn, C, thw), s_ref: (tn, C, 1) already cast to x's dtype.
    o_ref[...] = x_ref[...] * s_ref[...]


def _se_two_phase(x, w1, b1, w2, b2, *,
                  budget=_TILE_VMEM_BUDGET,
                  thw_pool=None, tn_pool=None,
                  thw_excite=None, tn_excite=None):
    N, C, HW = x.shape
    se = w1.shape[0]
    itemsize = jnp.dtype(x.dtype).itemsize

    # Per-kernel tile sizing: pool carries a double-buffered input block plus
    # an f32 copy of it; excite carries double-buffered input + output blocks
    # (no f32 temp).  Sizing them separately keeps each kernel's DMA multi-MB.
    pool_lane_bytes = C * (2 * itemsize + 4)
    excite_lane_bytes = C * (4 * itemsize)

    def _tiles(per_lane, thw, tn):
        if thw is None:
            if HW <= 128:
                thw = HW
            else:
                thw = (budget // per_lane) // 128 * 128
                thw = min(max(int(thw), 128), HW)
        if tn is None:
            if thw >= HW:
                tn = min(max(int(budget // (per_lane * HW)), 1), N)
            else:
                tn = 1
        return int(thw), int(tn)

    thw_p, tn_p = _tiles(pool_lane_bytes, thw_pool, tn_pool)
    thw_e, tn_e = _tiles(excite_lane_bytes, thw_excite, tn_excite)

    # Phase (a): pooling reduction over spatial tiles + fused MLP -> (N, C) gate.
    scale = pl.pallas_call(
        _make_pool_mlp_kernel(thw_p, HW),
        out_shape=jax.ShapeDtypeStruct((N, C), x.dtype),
        grid_spec=pltpu.PrefetchScalarGridSpec(
            num_scalar_prefetch=0,
            grid=(pl.cdiv(N, tn_p), pl.cdiv(HW, thw_p)),
            in_specs=[
                pl.BlockSpec((tn_p, C, thw_p), lambda n, t: (n, 0, t)),
                pl.BlockSpec((se, C), lambda n, t: (0, 0)),
                pl.BlockSpec((se, 1), lambda n, t: (0, 0)),
                pl.BlockSpec((C, se), lambda n, t: (0, 0)),
                pl.BlockSpec((C, 1), lambda n, t: (0, 0)),
            ],
            out_specs=pl.BlockSpec((tn_p, C), lambda n, t: (n, 0)),
            scratch_shapes=[pltpu.VMEM((tn_p, C), jnp.float32)],
        ),
        compiler_params=pltpu.CompilerParams(
            dimension_semantics=("parallel", "arbitrary"),
            vmem_limit_bytes=_VMEM_LIMIT_BYTES),
    )(x, w1, b1.reshape(se, 1), w2, b2.reshape(C, 1))

    # Phase (b): lane-dense element-wise excite streamed over spatial tiles.
    return pl.pallas_call(
        _excite_kernel,
        out_shape=jax.ShapeDtypeStruct((N, C, HW), x.dtype),
        grid_spec=pltpu.PrefetchScalarGridSpec(
            num_scalar_prefetch=0,
            grid=(pl.cdiv(N, tn_e), pl.cdiv(HW, thw_e)),
            in_specs=[
                pl.BlockSpec((tn_e, C, thw_e), lambda n, t: (n, 0, t)),
                pl.BlockSpec((tn_e, C, 1), lambda n, t: (n, 0, 0)),
            ],
            out_specs=pl.BlockSpec((tn_e, C, thw_e), lambda n, t: (n, 0, t)),
        ),
        compiler_params=pltpu.CompilerParams(
            dimension_semantics=("parallel", "parallel"),
            vmem_limit_bytes=_VMEM_LIMIT_BYTES),
    )(x, scale.reshape(N, C, 1))


# -------------------------------- wrapper ------------------------------------

def squeeze_excitation(x_nchw, w1, b1, w2, b2):
    """x_nchw: (N, C, H, W); w1: (se, C); b1: (se,); w2: (C, se); b2: (C,)."""
    N, C, H, W = x_nchw.shape
    HW = H * W
    itemsize = jnp.dtype(x_nchw.dtype).itemsize
    x = x_nchw.reshape(N, C, HW)

    # Fused path per grid step: double-buffered input + output tiles (4 copies
    # in the native dtype).  The pooling reduction streams lane slabs, so no
    # full-tile f32 transient is budgeted.
    per_elem_bytes = C * HW * 4 * itemsize

    if per_elem_bytes <= _TILE_VMEM_BUDGET:
        nb = max(1, _TILE_VMEM_BUDGET // per_elem_bytes)
        nb = min(int(nb), N, 128)            # 128 lanes: MXU-friendly incl. v5e
        if _LIKELY_TWO_TC and N >= 2:
            nb = min(nb, pl.cdiv(N, 2))      # >= 2 grid steps only on 2-TC parts
        out = _se_fused(x, w1, b1, w2, b2, int(nb))
    else:
        # Feature map too big for one VMEM block: pool(+MLP) then excite,
        # each sized independently to the VMEM budget.
        out = _se_two_phase(x, w1, b1, w2, b2)

    return out.reshape(N, C, H, W)


# ------------------------------- reference -----------------------------------

def _reference(x, w1, b1, w2, b2):
    x_se = jnp.mean(x, axis=(-2, -1), keepdims=True)              # (N, C, 1, 1)
    h = jnp.einsum("sc,nchw->nshw", w1, x_se) + b1[None, :, None, None]
    h = h * jax.nn.sigmoid(h)                                     # Swish
    s = jnp.einsum("cs,nshw->nchw", w2, h) + b2[None, :, None, None]
    return jax.nn.sigmoid(s) * x


if __name__ == "__main__":
    key = jax.random.PRNGKey(0)
    (kx, k1, kb1, k2, kb2,
     kx2, k3, kb3, k4, kb4) = jax.random.split(key, 10)

    # --- primary test: fused path ---
    inplanes, se_planes = 4, 2
    N, H, W = 4, 16, 16
    x = jax.random.normal(kx, (N, inplanes, H, W), dtype=jnp.float32)
    # Conv2d(inplanes, se_planes, 1): weight (se, C, 1, 1) -> (se, C), bias (se,)
    w1 = jax.random.normal(k1, (se_planes, inplanes), dtype=jnp.float32) * 0.5
    b1 = jax.random.normal(kb1, (se_planes,), dtype=jnp.float32) * 0.1
    # Conv2d(se_planes, inplanes, 1): weight (C, se, 1, 1) -> (C, se), bias (C,)
    w2 = jax.random.normal(k2, (inplanes, se_planes), dtype=jnp.float32) * 0.5
    b2 = jax.random.normal(kb2, (inplanes,), dtype=jnp.float32) * 0.1

    out = jax.block_until_ready(squeeze_excitation(x, w1, b1, w2, b2))
    ref = _reference(x, w1, b1, w2, b2)
    assert out.shape == x.shape
    assert jnp.allclose(out, ref, atol=1e-5, rtol=1e-5), "fused path mismatch"

    # --- fused path with batch padding (N % nb != 0) ---
    out_p = jax.block_until_ready(
        _se_fused(x[:3].reshape(3, inplanes, H * W), w1, b1, w2, b2, nb=2)
    ).reshape(3, inplanes, H, W)
    assert jnp.allclose(out_p, ref[:3], atol=1e-5, rtol=1e-5), "fused padded mismatch"

    # --- two-phase path: spatial tiling with masked partial last tile
    #     (HW = 400, thw = 128) ---
    C2, se2, N2, H2, W2 = 8, 4, 3, 20, 20
    x2 = jax.random.normal(kx2, (N2, C2, H2, W2), dtype=jnp.float32)
    w1b = jax.random.normal(k3, (se2, C2), dtype=jnp.float32) * 0.5
    b1b = jax.random.normal(kb3, (se2,), dtype=jnp.float32) * 0.1
    w2b = jax.random.normal(k4, (C2, se2), dtype=jnp.float32) * 0.5
    b2b = jax.random.normal(kb4, (C2,), dtype=jnp.float32) * 0.1

    out2 = jax.block_until_ready(
        _se_two_phase(x2.reshape(N2, C2, H2 * W2), w1b, b1b, w2b, b2b,
                      thw_pool=128, thw_excite=128)
    ).reshape(N2, C2, H2, W2)
    ref2 = _reference(x2, w1b, b1b, w2b, b2b)
    assert jnp.allclose(out2, ref2, atol=1e-5, rtol=1e-5), "two-phase mismatch"

    # --- two-phase path: batched n-tile (tn = 2, N = 3 -> padded batch rows) ---
    x3 = x2[:, :, :8, :8]                                         # HW = 64 <= 128
    out3 = jax.block_until_ready(
        _se_two_phase(x3.reshape(N2, C2, 64), w1b, b1b, w2b, b2b,
                      tn_pool=2, tn_excite=2)
    ).reshape(N2, C2, 8, 8)
    ref3 = _reference(x3, w1b, b1b, w2b, b2b)
    assert jnp.allclose(out3, ref3, atol=1e-5, rtol=1e-5), "two-phase tn>1 mismatch"

    print("KERNEL_OK")
</pallas_src>

<mosaic_0001>
module attributes {stable_mosaic.version = 11 : i64} {
  func.func @_se_fused_kernel(%arg0: i32, %arg1: memref<2x4x256xf32, #tpu.memory_space<vmem>>, %arg2: memref<2x4xf32, #tpu.memory_space<vmem>>, %arg3: memref<2x1xf32, #tpu.memory_space<vmem>>, %arg4: memref<4x2xf32, #tpu.memory_space<vmem>>, %arg5: memref<4x1xf32, #tpu.memory_space<vmem>>, %arg6: memref<2x4x256xf32, #tpu.memory_space<vmem>>) attributes {dimension_semantics = [#tpu.dimension_semantics<parallel>], iteration_bounds = array<i64: 2>, scalar_prefetch = 0 : i64, scratch_operands = 0 : i64, tpu.core_type = #tpu.core_type<tc>, window_params = [{transform_indices = @transform_0, window_bounds = array<i64: 2, 4, 256>}, {pipeline_mode = #tpu.pipeline_mode<synchronous>, transform_indices = @transform_1, window_bounds = array<i64: 2, 4>}, {pipeline_mode = #tpu.pipeline_mode<synchronous>, transform_indices = @transform_2, window_bounds = array<i64: 2, 1>}, {pipeline_mode = #tpu.pipeline_mode<synchronous>, transform_indices = @transform_3, window_bounds = array<i64: 4, 2>}, {pipeline_mode = #tpu.pipeline_mode<synchronous>, transform_indices = @transform_4, window_bounds = array<i64: 4, 1>}, {transform_indices = @transform_5, window_bounds = array<i64: 2, 4, 256>}]} {
    %cst = arith.constant 0.000000e+00 : f32
    %0 = vector.broadcast %cst : f32 to vector<2x4xf32>
    %c0_i32 = arith.constant 0 : i32
    %c256_i32 = arith.constant 256 : i32
    %1 = arith.muli %c0_i32, %c256_i32 : i32
    %2 = tpu.assume_multiple %1, 256 : i32
    %c0 = arith.constant 0 : index
    %c0_0 = arith.constant 0 : index
    %3 = arith.index_cast %2 : i32 to index
    %4 = vector.load %arg1[%c0, %c0_0, %3] : memref<2x4x256xf32, #tpu.memory_space<vmem>>, vector<2x4x256xf32>
    %cst_1 = arith.constant dense<0.000000e+00> : vector<2x4xf32>
    %5 = vector.multi_reduction <add>, %4, %cst_1 [2] : vector<2x4x256xf32> to vector<2x4xf32>
    %6 = arith.addf %0, %5 : vector<2x4xf32>
    %c1_i32 = arith.constant 1 : i32
    %cst_2 = arith.constant 3.906250e-03 : f32
    %7 = vector.broadcast %cst_2 : f32 to vector<2x4xf32>
    %8 = arith.mulf %6, %7 : vector<2x4xf32>
    %9 = tpu.transpose %8, [1, 0] : vector<2x4xf32> -> vector<4x2xf32>
    %c0_3 = arith.constant 0 : index
    %c0_4 = arith.constant 0 : index
    %10 = vector.load %arg2[%c0_3, %c0_4] : memref<2x4xf32, #tpu.memory_space<vmem>>, vector<2x4xf32>
    %cst_5 = arith.constant dense<0.000000e+00> : vector<2x2xf32>
    %11 = tpu.matmul %10, %9, %cst_5 {dimension_numbers = #tpu.dot_dimension_numbers<[1], [0], [0], [1], [0, 0, 1, 1], [], []>} : vector<2x4xf32>, vector<4x2xf32>, vector<2x2xf32> -> vector<2x2xf32>
    %c0_6 = arith.constant 0 : index
    %c0_7 = arith.constant 0 : index
    %12 = vector.load %arg3[%c0_6, %c0_7] : memref<2x1xf32, #tpu.memory_space<vmem>>, vector<2x1xf32>
    %13 = vector.broadcast %12 : vector<2x1xf32> to vector<2x2xf32>
    %14 = arith.addf %11, %13 : vector<2x2xf32>
    %15 = arith.negf %14 : vector<2x2xf32>
    %16 = math.exp %15 : vector<2x2xf32>
    %cst_8 = arith.constant 1.000000e+00 : f32
    %17 = vector.broadcast %cst_8 : f32 to vector<2x2xf32>
    %18 = arith.addf %17, %16 : vector<2x2xf32>
    %19 = arith.divf %17, %18 : vector<2x2xf32>
    %20 = arith.mulf %14, %19 : vector<2x2xf32>
    %c0_9 = arith.constant 0 : index
    %c0_10 = arith.constant 0 : index
    %21 = vector.load %arg4[%c0_9, %c0_10] : memref<4x2xf32, #tpu.memory_space<vmem>>, vector<4x2xf32>
    %cst_11 = arith.constant dense<0.000000e+00> : vector<4x2xf32>
    %22 = tpu.matmul %21, %20, %cst_11 {dimension_numbers = #tpu.dot_dimension_numbers<[1], [0], [0], [1], [0, 0, 1, 1], [], []>} : vector<4x2xf32>, vector<2x2xf32>, vector<4x2xf32> -> vector<4x2xf32>
    %c0_12 = arith.constant 0 : index
    %c0_13 = arith.constant 0 : index
    %23 = vector.load %arg5[%c0_12, %c0_13] : memref<4x1xf32, #tpu.memory_space<vmem>>, vector<4x1xf32>
    %24 = vector.broadcast %23 : vector<4x1xf32> to vector<4x2xf32>
    %25 = arith.addf %22, %24 : vector<4x2xf32>
    %26 = arith.negf %25 : vector<4x2xf32>
    %27 = math.exp %26 : vector<4x2xf32>
    %cst_14 = arith.constant 1.000000e+00 : f32
    %28 = vector.broadcast %cst_14 : f32 to vector<4x2xf32>
    %29 = arith.addf %28, %27 : vector<4x2xf32>
    %30 = arith.divf %28, %29 : vector<4x2xf32>
    %31 = tpu.transpose %30, [1, 0] : vector<4x2xf32> -> vector<2x4xf32>
    %32 = vector.shape_cast %31 : vector<2x4xf32> to vector<2x4x1xf32>
    %c0_i32_15 = arith.constant 0 : i32
    %c256_i32_16 = arith.constant 256 : i32
    %33 = arith.muli %c0_i32_15, %c256_i32_16 : i32
    %34 = tpu.assume_multiple %33, 256 : i32
    %c0_17 = arith.constant 0 : index
    %c0_18 = arith.constant 0 : index
    %35 = arith.index_cast %34 : i32 to index
    %36 = vector.load %arg1[%c0_17, %c0_18, %35] : memref<2x4x256xf32, #tpu.memory_space<vmem>>, vector<2x4x256xf32>
    %37 = vector.broadcast %32 : vector<2x4x1xf32> to vector<2x4x256xf32>
    %38 = arith.mulf %36, %37 : vector<2x4x256xf32>
    %c0_19 = arith.constant 0 : index
    %c0_20 = arith.constant 0 : index
    %39 = arith.index_cast %34 : i32 to index
    %40 = vector.load %arg6[%c0_19, %c0_20, %39] : memref<2x4x256xf32, #tpu.memory_space<vmem>>, vector<2x4x256xf32>
    tpu.vector_store %arg6[%c0_19, %c0_20, %39], %38 {strides = array<i32>} : memref<2x4x256xf32, #tpu.memory_space<vmem>>, vector<2x4x256xf32>,
    %c1_i32_21 = arith.constant 1 : i32
    return
  }
  func.func @transform_0(%arg0: i32) -> (i32, i32, i32) {
    %c0_i32 = arith.constant 0 : i32
    %c0_i32_0 = arith.constant 0 : i32
    %c0_i32_1 = arith.constant 0 : i32
    return %arg0, %c0_i32, %c0_i32_0 : i32, i32, i32
  }
  func.func @transform_1(%arg0: i32) -> (i32, i32) {
    %c0_i32 = arith.constant 0 : i32
    %c0_i32_0 = arith.constant 0 : i32
    %c0_i32_1 = arith.constant 0 : i32
    return %c0_i32, %c0_i32_0 : i32, i32
  }
  func.func @transform_2(%arg0: i32) -> (i32, i32) {
    %c0_i32 = arith.constant 0 : i32
    %c0_i32_0 = arith.constant 0 : i32
    %c0_i32_1 = arith.constant 0 : i32
    return %c0_i32, %c0_i32_0 : i32, i32
  }
  func.func @transform_3(%arg0: i32) -> (i32, i32) {
    %c0_i32 = arith.constant 0 : i32
    %c0_i32_0 = arith.constant 0 : i32
    %c0_i32_1 = arith.constant 0 : i32
    return %c0_i32, %c0_i32_0 : i32, i32
  }
  func.func @transform_4(%arg0: i32) -> (i32, i32) {
    %c0_i32 = arith.constant 0 : i32
    %c0_i32_0 = arith.constant 0 : i32
    %c0_i32_1 = arith.constant 0 : i32
    return %c0_i32, %c0_i32_0 : i32, i32
  }
  func.func @transform_5(%arg0: i32) -> (i32, i32, i32) {
    %c0_i32 = arith.constant 0 : i32
    %c0_i32_0 = arith.constant 0 : i32
    %c0_i32_1 = arith.constant 0 : i32
    return %arg0, %c0_i32, %c0_i32_0 : i32, i32, i32
  }
}

</mosaic_0001>

<bundles_post_ra>
// kernel: tpu_custom_call.1
= control target key start
LH: loop header
LB: loop body
LE: loop exit
PB: predicated region body
PF: predicated region fallthrough
CT: control target
= control target key end

     0   :  { %10 = vsyncpa [#allocation3], 0  ;;  %s1054_s0 = inlined_call_operand.hbm [shape: f32[4,4,256], index: 0, kind: input, shape index: {}]   ;;  %s1055_s1 = inlined_call_operand.vmem [shape: f32[2,4], index: 1, kind: input, shape index: {}]   ;;  %s1056_s2 = inlined_call_operand.vmem [shape: f32[2,1], index: 2, kind: input, shape index: {}]   ;;  %s1057_s3 = inlined_call_operand.vmem [shape: f32[4,2], index: 3, kind: input, shape index: {}]   ;;  %s1058_s4 = inlined_call_operand.vmem [shape: f32[4,1], index: 4, kind: input, shape index: {}]   ;;  %s1059_s5 = inlined_call_operand.hbm [shape: f32[4,4,256], index: 5, kind: output, shape index: {}]  }
   0x1   :  { %12 = vsyncpa [#allocation3 + $0x1], 0 }
   0x2   :  { %13 = vsyncpa [#allocation4], 0 }
   0x3   :  { %15 = vsyncpa [#allocation4 + $0x1], 0  ;;  %s864_s18 = smov 0   ;;  %s866_s19 = smov 0  }
   0x4   :  { %s868_s20 = smov 0   ;;  %s870_s21 = smov 0  }
   0x5 LB: > { %s885_s22 = sadd.s32 4294967295, %s822_s21   ;;  %s620_s23 = sadd.s32 4294967294, %s822_s21   ;;  %s822_s21 = sphi %s870_s21, %s1072_s21   ;;  %s818_s20 = sphi %s868_s20, %s1071_s20   ;;  %s814_s19 = sphi %s866_s19, %s1070_s19   ;;  %s810_s18 = sphi %s864_s18, %s1069_s18  }
   0x6   : > { %s889_s24 = sadd.s32 1, %s822_s21   ;;  %s28_s25 = sadd.s32 1, %s818_s20 }
   0x7   : > { %s25_s26 = ssub.s32 %s822_s21, %s889_s24  ;;  %p35_p0 = scmp.ne.s32.totalorder %s818_s20, %s814_s19 }
   0x8   : > { %p26_p1 = scmp.eq.s32.totalorder %s25_s26, 0  ;;  %p36_p2 = scmp.eq.s32.totalorder %s822_s21, 0 }
   0x9   : > { %p41_p3 = scmp.ne.s32.totalorder %s814_s19, %s810_s18  ;;  %p42_p4 = scmp.eq.s32.totalorder %s885_s22, 0 }
   0xa   : > { %s901_s27 = scalar_select %p26_p1, %s818_s20, %s28_s25  }
   0xb   : > { %p903_p5 = por %p36_p2, %p35_p0  ;;  %p907_p6 = por %p42_p4, %p41_p3 }
   0xc   : > { %p149_p7 = scmp.eq.s32.totalorder %s885_s22, 1  ;;  %p155_p8 = scmp.eq.s32.totalorder %s620_s23, 1 }
   0xd   : > { %p672_p10 = scmp.lt.s32.totalorder %s822_s21, 2  ;;  %s187_s7 = sand.u32 1, %s818_s20  }
   0xe   : > { %p914_p11 = por %p149_p7, %p35_p0  ;;  %p918_p12 = por %p155_p8, %p41_p3 }
   0xf   : > { %s643_s8 = sshll.u32 %s822_s21, 8  ;;  %s623_s9 = sshll.u32 %s187_s7, 4 }
  0x10   : > { %s1063_s30 = scalar_select %p914_p11, 1, 0 }
  0x11   : > { %s1064_s6 = scalar_select %p918_p12, 1, 0 }
  0x12   : > { %s927_s12 = scalar_lea.hbm %s1054_s0, %s643_s8  ;;  %s191_s13 = scalar_lea.vmem [#allocation2], %s623_s9 }
  0x13   : > { %s199_s14 = sshll.u32 %s191_s13, 4  ;;  %p931_p13 = pnand %p672_p10, %p903_p5  ;;  %s935_s14 = int_to_ptr.vmem [resolvable:$true] %s199_s14 }
  0x14   : > { %s937_s16 = scalar_lea.sflag [#allocation3], %s187_s7  ;;  %s726_s17 = scalar_lea.hbm %s927_s12, 256 }
  0x15   : > { %p727_p0 = scmp.ne.s32.totalorder %s927_s12, %s726_s17  ;;  %p728_p1 = pneg %p931_p13 }
  0x16   : > { %s731_s26 = scalar_lea.hbm %s1054_s0, 512  ;;  %p732_p4 = scmp.lt.u32.totalorder %s927_s12, %s1054_s0 }
  0x17   : > { %p729_p2 = pnand %p728_p1, %p727_p0  ;;  %p733_p5 = scmp.lt.u32.totalorder %s731_s26, %s726_s17 }
  0x18   : > { %p735_p8 = scmp.lt.u32.totalorder %s726_s17, %s927_s12 }
  0x19   : > { %p730_p3 = pneg %p729_p2  ;;  %p734_p7 = por %p733_p5, %p732_p4 }
  0x1b   : > { %p736_p10 = por %p735_p8, %p734_p7 }
  0x1d   : > { %p737_p9 = pnand %p736_p10, %p730_p3 }
  0x1f   : > { %740 = shalt.err (!%p737_p9)
}
  0x20   : > { %s741_s7 = scalar_lea.vmem %s935_s14, 256  ;;  %s824_s9 = smov [#allocation2]  }
  0x21   : > { %p742_p0 = scmp.ne.s32.totalorder %s935_s14, %s741_s7  ;;  %s746_s10 = sshll.u32 %s824_s9, 4  ;;  %s747_s10 = int_to_ptr.vmem [resolvable:$false] %s746_s10 }
  0x22   : > { %s748_s11 = scalar_lea.vmem %s747_s10, 512  ;;  %p749_p11 = scmp.lt.s32.totalorder %s935_s14, %s747_s10 }
  0x23   : > { %p744_p2 = pnand %p742_p0, %p728_p1  ;;  %p750_p4 = scmp.lt.s32.totalorder %s748_s11, %s741_s7 }
  0x25   : > { %p745_p12 = pneg %p744_p2  ;;  %p751_p5 = por %p750_p4, %p749_p11 }
  0x27   : > { %p752_p7 = pnand %p751_p5, %p745_p12 }
  0x29   : > { %755 = shalt.err (!%p752_p7)
}
  0x2a   : > { %s825_s13 = smov 128   ;;  %s826_s17 = smov 8  }
  0x2b   : > { %667 = dma.hbm_to_vmem [thread:$0]  (!%p931_p13), %s927_s12, 256, %s935_s14, %s937_s16, %s825_s13, %s825_s13, %s826_s17  }
  0x2c   : > { %p627_p9 = scmp.ge.s32.totalorder %s822_s21, 1  ;;  %p207_p1 = scmp.lt.s32.totalorder %s822_s21, 3 }
  0x2e   : > { %p208_p3 = pnand %p627_p9, %p207_p1 }
  0x2f   : > { %s968_s23 = sand.u32 (!%p208_p3), 1, %s814_s19  }
  0x30   : > { %211 = sbr.rel (%p208_p3) target bundleno = 968 (0x3c8), region = 40  ;;  %s628_s25 = sshll.u32 (!%p208_p3), %s968_s23, 4 }
  0x31   : > { %s214_s26 = scalar_lea.sflag (!%p208_p3), [#allocation3], %s968_s23  ;;  %s217_s28 = scalar_lea.vmem (!%p208_p3), [#allocation2], %s628_s25 }
  0x37   : > { %801 = dma.done.wait (%p907_p6), %s214_s26, 256  }
  0x38   : > { %803 = vsyncadd (%p907_p6), %s214_s26, 4294967040  ;;  %vm254_vm0 = vcmask 1043456   ;;  %v978_v0 = vld [vmem:[%s217_s28] sm:$0xff]  ;;  %v980_v1 = vld [vmem:[%s217_s28 + $0x8] sm:$0xff]  ;;  %v827_v10 = vmov 0.0   ;;  %vm828_vm1 = vmmov 0   ;;  %v278_v14 = vlaneseq }
  0x39   : > { %v250_v2 = vcombine.high %v978_v0, %v978_v0  ;;  %v255_v3 = vsel %vm254_vm0, %v978_v0, 0.0  ;;  %v251_v4 = vcombine.high %v980_v1, %v980_v1  ;;  %v260_v6 = vsel %vm254_vm0, %v980_v1, 0.0  ;;  %650 = vmatprep.subr.mxu0 %v827_v10  ;;  %655 = vmatprep.subr.mxu1 %v827_v10  ;;  %v270_v11 = vld [vmem:[%s1056_s2] sm:$0x3]  ;;  %s243_s10 = scalar_lea.vmem [#allocation5], %s628_s25  ;;  %s645_s13 = sshll.u32 %s885_s22, 8 }
  0x3a   : > { %652 = vmatprep.mubr.msk.f32.mxu0 %vm828_vm1, %v827_v10  ;;  %657 = vmatprep.mubr.msk.f32.mxu1 %vm828_vm1, %v827_v10  ;;  %v829_v12 = vmov 0   ;;  %v374_v13 = vld [vmem:[%s1058_s4] sm:$0xf]  ;;  %v279_v15 = vand.u32 127, %v278_v14  ;;  %v281_v16 = vshrl.u32 %v278_v14, 7  ;;  %vm288_vm2 = vcmask 1041409   ;;  %s1009_s28 = scalar_lea.hbm %s1059_s5, %s645_s13 }
  0x3b   : > { %v256_v5 = vsel %vm254_vm0, %v250_v2, 0.0  ;;  %v261_v7 = vsel %vm254_vm0, %v251_v4, 0.0  ;;  %714 = vset.pattern.permute.xlu1 %v829_v12  ;;  %vm290_vm3 = vcmask 31744   ;;  %v269_v25 = vld [vmem:[%s1055_s1] sm:$0x3]  ;;  %vm384_vm4 = vcmask 1041408  }
  0x3c   : > { %v257_v8 = vadd.f32 %v256_v5, %v255_v3  ;;  %v262_v9 = vadd.f32 %v261_v7, %v260_v6  ;;  %273 = vperm.xlu1 %714, %v270_v11   ;;  %v282_v18 = vsub.s32 %v279_v15, %v281_v16  ;;  %v373_v35 = vld [vmem:[%s1057_s3] sm:$0xf]  ;;  %vm380_vm5 = vcmask 15360   ;;  %s547_s11 = sshll.u32 %s243_s10, 4  ;;  %s533_s25 = scalar_lea.sflag [#allocation4], %s968_s23  ;;  %s1004_s11 = int_to_ptr.vmem [resolvable:$true] %s547_s11 }
  0x3d   : > { %v498_v44 = vsub.s32 0, %v281_v16  ;;  %v505_v46 = vsub.s32 1, %v281_v16  ;;  %v830_v49 = vmov 839922192   ;;  %s756_s29 = scalar_lea.vmem %s1004_s11, 256  ;;  %p1066_p11 = scmp.ne.s32.totalorder %s1063_s30, 0 }
  0x3e   : > { %258 = vadd.xlane.f32.xlu0 %v257_v8  ;;  %v513_v50 = vunpack.c.l.s4 %v830_v49  ;;  %p757_p6 = scmp.ne.s32.totalorder %s1004_s11, %s756_s29  ;;  %s831_s22 = smov [#allocation5]  }
  0x3f   : > { %s760_s12 = sshll.u32 %s831_s22, 4  ;;  %s761_s12 = int_to_ptr.vmem [resolvable:$false] %s760_s12 }
  0x40   : > { %377 = vperm.xlu1 %714, %v374_v13   ;;  %v514_v51 = vunpack.c.0.s8 %v513_v50  ;;  %p758_p12 = pnand %p757_p6, %p1066_p11  ;;  %s762_s14 = scalar_lea.vmem %s761_s12, 512 }
  0x41   : > { %p763_p8 = scmp.lt.s32.totalorder %s1004_s11, %s761_s12  ;;  %p764_p10 = scmp.lt.s32.totalorder %s762_s14, %s756_s29 }
  0x42   : > { %263 = vadd.xlane.f32.xlu0 %v262_v9  ;;  %v517_v52 = vsub.s32 %v514_v51, %v281_v16  ;;  %p759_p13 = pneg %p758_p12 }
  0x43   : > { %p765_p0 = por %p764_p10, %p763_p8 }
  0x45   : > { %p766_p2 = pnand %p765_p0, %p759_p13 }
  0xbb   : > { %v274_v26 = vpop.permute.xlu1 %273 }
  0xbf   : > { %v378_v36 = vpop.permute.xlu1 %377 }
  0xcb   : > { %v259_v17 = vpop.xlane.xlu0 %258 }
  0xcc   : > { %v267_v19 = vmul.f32 0.00390625, %v259_v17 }
  0xce   : > { %v283_v22 = vrot.slane %v267_v19, %v282_v18 }
  0xcf   : > { %v264_v20 = vpop.xlane.xlu0 %263 }
  0xd0   : > { %v268_v21 = vmul.f32 0.00390625, %v264_v20 }
  0xd2   : > { %v287_v23 = vrot.slane %v268_v21, %v282_v18 }
  0xd4   : > { %v289_v24 = vsel %vm288_vm2, %v287_v23, %v283_v22 }
  0xd5   : > { %651 = vmatpush3.xpose.msk.msra.mxu0 %vm290_vm3, %v289_v24 }
  0xd8   : > { %653 = vmatmul.mubr.msk.f32.vlgmr.msra.gmra.mrb[0].mxu0 %vm290_vm3, %v269_v25 }
 0x1ab   : > { %v362_v27 = vpop.f32.mrb[0].mxu0 }
 0x1ac   : > { %v363_v28 = vadd.f32 %v362_v27, %v274_v26  ;;  %v654_v29 = vpop.f32.mrb[1].mxu0 }
 0x1ae   : > { %v632_v30 = vmul.f32 -1.442695, %v363_v28 }
 0x1b0   : > { %718 = vpow2.f32 %v632_v30 }
 0x1ba   : > { %v719_v31 = vpop.eup %718 }
 0x1bb   : > { %v369_v32 = vadd.f32 1.0, %v719_v31 }
 0x1bd   : > { %720 = vrcp.f32 %v369_v32 }
 0x1c7   : > { %v721_v33 = vpop.eup %720 }
 0x1c8   : > { %v372_v34 = vmul.f32 %v721_v33, %v363_v28 }
 0x1ca   : > { %656 = vmatpush3.msk.msra.mxu1 %vm384_vm4, %v372_v34 }
 0x1cb   : > { %658 = vmatmul.mubr.msk.f32.vlgmr.msra.gmra.mrb[0].mxu1 %vm380_vm5, %v373_v35 }
 0x29e   : > { %v454_v37 = vpop.f32.mrb[0].mxu1 }
 0x29f   : > { %v455_v38 = vadd.f32 %v454_v37, %v378_v36  ;;  %v659_v39 = vpop.f32.mrb[1].mxu1 }
 0x2a1   : > { %v635_v40 = vmul.f32 -1.442695, %v455_v38 }
 0x2a3   : > { %722 = vpow2.f32 %v635_v40 }
 0x2ad   : > { %v723_v41 = vpop.eup %722 }
 0x2ae   : > { %v461_v42 = vadd.f32 1.0, %v723_v41 }
 0x2b0   : > { %724 = vrcp.f32 %v461_v42 }
 0x2ba   : > { %v725_v43 = vpop.eup %724 }
 0x2bb   : > { %464 = vxpose.xlu0.b32.start.end [1/1] (short) (narrow) %v725_v43, 8 }
 0x2e4   : > { %715 = vset.pattern.permute.xlu0 %v829_v12 }
 0x33b   : > { %v480_v45 = vpop.trf.xlu0 }
 0x33c   : > { %v499_v47 = vrot.slane %v480_v45, %v498_v44  ;;  %v506_v48 = vrot.slane %v480_v45, %v505_v46 }
 0x33e   : > { %501 = vbcast.lane.b32.xlu1 %v499_v47, 256 }
 0x342   : > { %508 = vbcast.lane.b32.xlu1 %v506_v48, 256 }
 0x3b0   : > { %v502_v53 = vpop.permute.xlu1 %501 }
 0x3b1   : > { %v518_v54 = vrot.slane %v502_v53, %v517_v52 }
 0x3b3   : > { %v528_v55 = vmul.f32 %v518_v54, %v978_v0 }
 0x3b4   : > { %v509_v56 = vpop.permute.xlu1 %508 }
 0x3b5   : > { %530 = vst [vmem:[%s243_s10] sm:$0xff] %v528_v55  ;;  %v525_v57 = vrot.slane %v509_v56, %v517_v52 }
 0x3b7   : > { %v529_v58 = vmul.f32 %v525_v57, %v980_v1 }
 0x3b9   : > { %531 = vst [vmem:[%s243_s10 + $0x8] sm:$0xff] %v529_v58 }
 0x3ba   : > { %769 = shalt.err (!%p766_p2)
}
 0x3bb   : > { %s770_s15 = scalar_lea.hbm %s1009_s28, 256  ;;  %s774_s7 = scalar_lea.hbm %s1059_s5, 512 }
 0x3bc   : > { %p771_p4 = scmp.ne.s32.totalorder %s1009_s28, %s770_s15  ;;  %p775_p9 = scmp.lt.u32.totalorder %s1009_s28, %s1059_s5 }
 0x3bd   : > { %p776_p1 = scmp.lt.u32.totalorder %s774_s7, %s770_s15  ;;  %p778_p6 = scmp.lt.u32.totalorder %s770_s15, %s1009_s28 }
 0x3be   : > { %p772_p5 = pnand %p771_p4, %p1066_p11 }
 0x3bf   : > { %p777_p3 = por %p776_p1, %p775_p9 }
 0x3c0   : > { %p773_p7 = pneg %p772_p5 }
 0x3c1   : > { %p779_p12 = por %p778_p6, %p777_p3 }
 0x3c3   : > { %p780_p13 = pnand %p779_p12, %p773_p7 }
 0x3c5   : > { %783 = shalt.err (!%p780_p13)
}
 0x3c6   : > { %s832_s13 = smov 128   ;;  %s833_s17 = smov 8  }
 0x3c7   : > { %662 = dma.vmem_to_hbm [thread:$0]  (%p1066_p11), %s1004_s11, 256, %s1009_s28, %s533_s25, %s832_s13, %s832_s13, %s833_s17  }
 0x3c8 PF: > { %s562_s26 = sand.u32 1, %s810_s18   ;;  %p1067_p8 = scmp.ne.s32.totalorder %s1064_s6, 0 }
 0x3c9   : > { %p1068_p10 = scmp.ge.s32.totalorder %s822_s21, 2  ;;  %s563_s29 = scalar_lea.sflag [#allocation4], %s562_s26 }
 0x3cb   : > { %p669_p0 = pnand %p1068_p10, %p1067_p8 }
 0x3cd   : > { %805 = dma.done.wait (!%p669_p0), %s563_s29, 256  }
 0x3ce   : > { %807 = vsyncadd (!%p669_p0), %s563_s29, 4294967040  ;;  %p18_p2 = scmp.ge.s32.totalorder %s889_s24, 4   ;;  %s1069_s18 = smov %s814_s19 }
 0x3cf   : > { %s1070_s19 = smov %s818_s20  ;;  %s1071_s20 = smov %s901_s27 }
 0x3d0   : > { %s1072_s21 = smov %s889_s24  ;;  %20 = sbr.rel (!%p18_p2) target bundleno = 5 (0x5), region = 85 }
 0x3d7   :  { %568 = vsyncpa [#allocation3], 1 }
 0x3d8   :  { %570 = vsyncpa [#allocation3 + $0x1], 1 }
 0x3d9   :  { %571 = vsyncpa [#allocation4], 1 }
 0x3da   :  { %573 = vsyncpa [#allocation4 + $0x1], 1 }

</bundles_post_ra>
